<compile_context>
chip_gen: v5e
topology: v5e:2x2
jax: 0.10.0
libtpu: 0.0.40
codegen_flags: <defaults>
</compile_context>

<pallas_src>
import functools

import jax
import jax.numpy as jnp
from jax.experimental import pallas as pl
from jax.experimental.pallas import tpu as pltpu


# ---------------------------------------------------------------------------
# Kernel
# ---------------------------------------------------------------------------
def twod_gnet_kernel(x_ref, w1_ref, b1_ref, w2_ref, b2_ref, out_ref):
    # x_ref:  (TB, D)   flattened image tile
    # w1_ref: (D, Hp)   hidden weight (transposed, lane-padded), resident
    # b1_ref: (1, Hp)
    # w2_ref: (Hp, Op)  output weight (transposed, lane-padded), resident
    # b2_ref: (1, Op)   padded columns hold -1e30 -> softmax prob exactly 0
    # out_ref:(TB, Op)  softmax probabilities (lane-dense stores)
    x = x_ref[...]

    # Hidden layer: Linear + ReLU (MXU matmul, f32 accumulation).
    h = jnp.dot(x, w1_ref[...], preferred_element_type=jnp.float32) + b1_ref[...]
    h = jnp.maximum(h, 0.0)

    # Output layer: Linear.
    logits = jnp.dot(h, w2_ref[...], preferred_element_type=jnp.float32) + b2_ref[...]

    # Numerically stable softmax along dim=1.  Padded columns have logit
    # ~ -1e30 so exp(...) underflows to exactly 0 (no probability leak).
    m = jnp.max(logits, axis=1, keepdims=True)
    e = jnp.exp(logits - m)
    denom = jnp.sum(e, axis=1, keepdims=True)          # (TB, 1)
    inv = 1.0 / denom                                   # per-row divide (TB divides, not TB*128)
    out_ref[...] = (e * inv).astype(out_ref.dtype)      # cheap VALU broadcast multiply


# ---------------------------------------------------------------------------
# Wrapper helpers
# ---------------------------------------------------------------------------
def _round_up(n, m):
    return ((n + m - 1) // m) * m


# ~6.5 MiB/step double-buffered at TB=2048 -> fits v5e's 16 MiB default scoped
# VMEM; comfortably under v6e (32 MiB) and v7x budgets.
_VMEM_SAFE_MAX_TB = 2048


def _pick_batch_tile(bp8, batch_tile):
    """Pick a sublane-aligned batch tile; prefer one that divides bp8 exactly."""
    cap = min(batch_tile, _VMEM_SAFE_MAX_TB, bp8)
    cap = max(8, cap - cap % 8)

    # Largest multiple-of-8 divisor of bp8 that fits under cap -> grid tiles
    # cover the (8-padded) batch exactly, no activation repack needed.
    m = bp8 // 8
    tb = 8
    for k in range(cap // 8, 0, -1):
        if m % k == 0:
            tb = 8 * k
            break

    # Pathological batch sizes (e.g. 8 * large prime): accept a non-dividing
    # tile and pad the batch instead (rare; costs one extra activation copy).
    if tb < min(cap, 128):
        tb = cap

    # v7x megacore: if one tile would swallow the whole batch, split into two
    # grid steps so dimension_semantics=("parallel",) can use both TensorCores.
    if tb == bp8 and bp8 >= 16 and bp8 % 16 == 0:
        tb = bp8 // 2
    return tb


def prepare_twod_gnet_params(w1, b1, w2, b2):
    """Pad weights/biases to lane-dense (multiple-of-128) feature dims ONCE.

    Hoisted out of the forward so repeated inference does not re-materialize
    ~260 KiB of padded weights every call."""
    D, Hn = w1.shape
    O = w2.shape[1]
    Hp = _round_up(Hn, 128)
    Op = _round_up(O, 128)

    w1p = jnp.zeros((D, Hp), jnp.float32).at[:, :Hn].set(w1.astype(jnp.float32))
    b1p = jnp.zeros((1, Hp), jnp.float32).at[:, :Hn].set(b1.astype(jnp.float32))
    w2p = jnp.zeros((Hp, Op), jnp.float32).at[:Hn, :O].set(w2.astype(jnp.float32))
    # Finite, hugely negative bias (NOT -inf: avoids (-inf)-(-inf) -> NaN) so
    # padded logit columns get exactly zero softmax probability.
    b2p = jnp.full((1, Op), -1e30, jnp.float32).at[:, :O].set(b2.astype(jnp.float32))
    return w1p, b1p, w2p, b2p


@functools.partial(jax.jit, static_argnames=("nr_out", "batch_tile"))
def twod_gnet_forward(x, w1p, b1p, w2p, b2p, *, nr_out, batch_tile=1024):
    """x: (B, H, W).  w*p/b*p: padded params from prepare_twod_gnet_params.
    Returns (B, nr_out) softmax probabilities."""
    B = x.shape[0]
    x_flat = x.reshape(B, -1).astype(jnp.float32)   # == torch x.view(B, -1)
    D = x_flat.shape[1]
    Hp = w1p.shape[1]
    Op = w2p.shape[1]

    # --- batch tiling --------------------------------------------------------
    bp8 = _round_up(B, 8)
    TB = _pick_batch_tile(bp8, batch_tile)
    Bp = _round_up(bp8, TB)
    if Bp != B:
        # Common case: pad only up to the next multiple of 8 (<= 7 rows); the
        # full repack to a TB multiple happens only for pathological B.
        x_flat = jnp.pad(x_flat, ((0, Bp - B), (0, 0)))
    grid = (Bp // TB,)

    # Advisory cost estimate for XLA's scheduler.
    cost = pl.CostEstimate(
        flops=2 * Bp * D * Hp + 2 * Bp * Hp * Op,
        transcendentals=Bp * Op,
        bytes_accessed=4 * (Bp * D + D * Hp + Hp * Op + Bp * Op),
    )

    out_padded = pl.pallas_call(
        twod_gnet_kernel,
        out_shape=jax.ShapeDtypeStruct((Bp, Op), jnp.float32),
        grid=grid,
        in_specs=[
            pl.BlockSpec((TB, D), lambda i: (i, 0)),   # x: tiled over batch
            pl.BlockSpec((D, Hp), lambda i: (0, 0)),   # weights stay resident
            pl.BlockSpec((1, Hp), lambda i: (0, 0)),
            pl.BlockSpec((Hp, Op), lambda i: (0, 0)),
            pl.BlockSpec((1, Op), lambda i: (0, 0)),
        ],
        out_specs=pl.BlockSpec((TB, Op), lambda i: (i, 0)),
        compiler_params=pltpu.CompilerParams(
            dimension_semantics=("parallel",)
        ),
        cost_estimate=cost,
    )(x_flat, w1p, b1p, w2p, b2p)

    # Slice inside jit so XLA can fuse it with surrounding ops / consumers;
    # the kernel's own stores stay lane-dense (Op = 128), unmasked vst.
    return out_padded[:B, :nr_out]


# ---------------------------------------------------------------------------
# Init + pure-JAX reference
# ---------------------------------------------------------------------------
def init_params(key, image_height, image_width, nr_hidden_nodes, nr_output_nodes):
    """Deterministic init mimicking nn.Linear's U(-1/sqrt(fan_in), +1/sqrt(fan_in))."""
    D = image_height * image_width
    k1, k2, k3, k4 = jax.random.split(key, 4)

    bound1 = 1.0 / jnp.sqrt(D)
    # stored already transposed: (in, out)
    w1 = jax.random.uniform(k1, (D, nr_hidden_nodes), jnp.float32, -bound1, bound1)
    b1 = jax.random.uniform(k2, (1, nr_hidden_nodes), jnp.float32, -bound1, bound1)

    bound2 = 1.0 / jnp.sqrt(nr_hidden_nodes)
    w2 = jax.random.uniform(k3, (nr_hidden_nodes, nr_output_nodes), jnp.float32,
                            -bound2, bound2)
    b2 = jax.random.uniform(k4, (1, nr_output_nodes), jnp.float32, -bound2, bound2)
    return w1, b1, w2, b2


def reference_forward(x, w1, b1, w2, b2):
    """Pure-JAX reference for sanity check."""
    B = x.shape[0]
    xf = x.reshape(B, -1).astype(jnp.float32)
    h = jnp.maximum(xf @ w1 + b1, 0.0)
    logits = h @ w2 + b2
    return jax.nn.softmax(logits, axis=1)


# ---------------------------------------------------------------------------
# Demo / self-test
# ---------------------------------------------------------------------------
if __name__ == "__main__":
    image_height = 16
    image_width = 16
    nr_hidden_nodes = 32
    nr_output_nodes = 8

    key = jax.random.PRNGKey(0)
    kp, kx1, kx2, kx3 = jax.random.split(key, 4)

    w1, b1, w2, b2 = init_params(kp, image_height, image_width,
                                 nr_hidden_nodes, nr_output_nodes)
    w1p, b1p, w2p, b2p = prepare_twod_gnet_params(w1, b1, w2, b2)

    # ---- case 1: the module's toy batch (B=2), single 8-row tile ------------
    batch = 2
    x = jax.random.normal(kx1, (batch, image_height, image_width), dtype=jnp.float32)
    out = jax.block_until_ready(
        twod_gnet_forward(x, w1p, b1p, w2p, b2p, nr_out=nr_output_nodes))
    ref = reference_forward(x, w1, b1, w2, b2)
    assert out.shape == (batch, nr_output_nodes)
    assert jnp.allclose(out, ref, atol=1e-5, rtol=1e-5)
    assert jnp.allclose(jnp.sum(out, axis=1), 1.0, atol=1e-5)

    # ---- case 2: multi-step grid + small batch pad (B=20, TB=8 -> grid=(3,)) -
    batch2 = 20
    x2 = jax.random.normal(kx2, (batch2, image_height, image_width), dtype=jnp.float32)
    out2 = jax.block_until_ready(
        twod_gnet_forward(x2, w1p, b1p, w2p, b2p,
                          nr_out=nr_output_nodes, batch_tile=8))
    ref2 = reference_forward(x2, w1, b1, w2, b2)
    assert out2.shape == (batch2, nr_output_nodes)
    assert jnp.allclose(out2, ref2, atol=1e-5, rtol=1e-5)
    assert jnp.allclose(jnp.sum(out2, axis=1), 1.0, atol=1e-5)

    # ---- case 3: default tile with the v7x two-step split (B=64 -> TB=32) ---
    batch3 = 64
    x3 = jax.random.normal(kx3, (batch3, image_height, image_width), dtype=jnp.float32)
    out3 = jax.block_until_ready(
        twod_gnet_forward(x3, w1p, b1p, w2p, b2p, nr_out=nr_output_nodes))
    ref3 = reference_forward(x3, w1, b1, w2, b2)
    assert out3.shape == (batch3, nr_output_nodes)
    assert jnp.allclose(out3, ref3, atol=1e-5, rtol=1e-5)
    assert jnp.allclose(jnp.sum(out3, axis=1), 1.0, atol=1e-5)

    print("KERNEL_OK")
</pallas_src>

<mosaic_0001>
module attributes {stable_mosaic.version = 11 : i64} {
  func.func @twod_gnet_kernel(%arg0: i32, %arg1: memref<8x256xf32, #tpu.memory_space<vmem>>, %arg2: memref<256x128xf32, #tpu.memory_space<vmem>>, %arg3: memref<1x128xf32, #tpu.memory_space<vmem>>, %arg4: memref<128x128xf32, #tpu.memory_space<vmem>>, %arg5: memref<1x128xf32, #tpu.memory_space<vmem>>, %arg6: memref<8x128xf32, #tpu.memory_space<vmem>>) attributes {dimension_semantics = [#tpu.dimension_semantics<parallel>], iteration_bounds = array<i64: 1>, scalar_prefetch = 0 : i64, scratch_operands = 0 : i64, tpu.core_type = #tpu.core_type<tc>, window_params = [{transform_indices = @transform_0, window_bounds = array<i64: 8, 256>}, {pipeline_mode = #tpu.pipeline_mode<synchronous>, transform_indices = @transform_1, window_bounds = array<i64: 256, 128>}, {pipeline_mode = #tpu.pipeline_mode<synchronous>, transform_indices = @transform_2, window_bounds = array<i64: 1, 128>}, {pipeline_mode = #tpu.pipeline_mode<synchronous>, transform_indices = @transform_3, window_bounds = array<i64: 128, 128>}, {pipeline_mode = #tpu.pipeline_mode<synchronous>, transform_indices = @transform_4, window_bounds = array<i64: 1, 128>}, {transform_indices = @transform_5, window_bounds = array<i64: 8, 128>}]} {
    %c0 = arith.constant 0 : index
    %c0_0 = arith.constant 0 : index
    %0 = vector.load %arg1[%c0, %c0_0] : memref<8x256xf32, #tpu.memory_space<vmem>>, vector<8x256xf32>
    %c0_1 = arith.constant 0 : index
    %c0_2 = arith.constant 0 : index
    %1 = vector.load %arg2[%c0_1, %c0_2] : memref<256x128xf32, #tpu.memory_space<vmem>>, vector<256x128xf32>
    %cst = arith.constant dense<0.000000e+00> : vector<8x128xf32>
    %2 = tpu.matmul %0, %1, %cst {dimension_numbers = #tpu.dot_dimension_numbers<[1], [0], [0], [1], [0, 0, 1, 1], [], []>} : vector<8x256xf32>, vector<256x128xf32>, vector<8x128xf32> -> vector<8x128xf32>
    %c0_3 = arith.constant 0 : index
    %c0_4 = arith.constant 0 : index
    %3 = vector.load %arg3[%c0_3, %c0_4] : memref<1x128xf32, #tpu.memory_space<vmem>>, vector<1x128xf32>
    %4 = vector.broadcast %3 : vector<1x128xf32> to vector<8x128xf32>
    %5 = arith.addf %2, %4 : vector<8x128xf32>
    %cst_5 = arith.constant 0.000000e+00 : f32
    %6 = vector.broadcast %cst_5 : f32 to vector<8x128xf32>
    %7 = arith.maximumf %5, %6 : vector<8x128xf32>
    %c0_6 = arith.constant 0 : index
    %c0_7 = arith.constant 0 : index
    %8 = vector.load %arg4[%c0_6, %c0_7] : memref<128x128xf32, #tpu.memory_space<vmem>>, vector<128x128xf32>
    %cst_8 = arith.constant dense<0.000000e+00> : vector<8x128xf32>
    %9 = tpu.matmul %7, %8, %cst_8 {dimension_numbers = #tpu.dot_dimension_numbers<[1], [0], [0], [1], [0, 0, 1, 1], [], []>} : vector<8x128xf32>, vector<128x128xf32>, vector<8x128xf32> -> vector<8x128xf32>
    %c0_9 = arith.constant 0 : index
    %c0_10 = arith.constant 0 : index
    %10 = vector.load %arg5[%c0_9, %c0_10] : memref<1x128xf32, #tpu.memory_space<vmem>>, vector<1x128xf32>
    %11 = vector.broadcast %10 : vector<1x128xf32> to vector<8x128xf32>
    %12 = arith.addf %9, %11 : vector<8x128xf32>
    %cst_11 = arith.constant dense<0xFF800000> : vector<8xf32>
    %13 = vector.multi_reduction <maximumf>, %12, %cst_11 [1] : vector<8x128xf32> to vector<8xf32>
    %14 = vector.shape_cast %13 : vector<8xf32> to vector<8x1xf32>
    %15 = vector.broadcast %14 : vector<8x1xf32> to vector<8x128xf32>
    %16 = arith.subf %12, %15 : vector<8x128xf32>
    %17 = math.exp %16 : vector<8x128xf32>
    %cst_12 = arith.constant dense<0.000000e+00> : vector<8xf32>
    %18 = vector.multi_reduction <add>, %17, %cst_12 [1] : vector<8x128xf32> to vector<8xf32>
    %19 = vector.shape_cast %18 : vector<8xf32> to vector<8x1xf32>
    %cst_13 = arith.constant 1.000000e+00 : f32
    %20 = vector.broadcast %cst_13 : f32 to vector<8x1xf32>
    %21 = arith.divf %20, %19 : vector<8x1xf32>
    %22 = vector.broadcast %21 : vector<8x1xf32> to vector<8x128xf32>
    %23 = arith.mulf %17, %22 : vector<8x128xf32>
    %c0_14 = arith.constant 0 : index
    %c0_15 = arith.constant 0 : index
    %24 = vector.load %arg6[%c0_14, %c0_15] : memref<8x128xf32, #tpu.memory_space<vmem>>, vector<8x128xf32>
    tpu.vector_store %arg6[%c0_14, %c0_15], %23 {strides = array<i32>} : memref<8x128xf32, #tpu.memory_space<vmem>>, vector<8x128xf32>,
    return
  }
  func.func @transform_0(%arg0: i32) -> (i32, i32) {
    %c0_i32 = arith.constant 0 : i32
    %c0_i32_0 = arith.constant 0 : i32
    return %arg0, %c0_i32 : i32, i32
  }
  func.func @transform_1(%arg0: i32) -> (i32, i32) {
    %c0_i32 = arith.constant 0 : i32
    %c0_i32_0 = arith.constant 0 : i32
    %c0_i32_1 = arith.constant 0 : i32
    return %c0_i32, %c0_i32_0 : i32, i32
  }
  func.func @transform_2(%arg0: i32) -> (i32, i32) {
    %c0_i32 = arith.constant 0 : i32
    %c0_i32_0 = arith.constant 0 : i32
    %c0_i32_1 = arith.constant 0 : i32
    return %c0_i32, %c0_i32_0 : i32, i32
  }
  func.func @transform_3(%arg0: i32) -> (i32, i32) {
    %c0_i32 = arith.constant 0 : i32
    %c0_i32_0 = arith.constant 0 : i32
    %c0_i32_1 = arith.constant 0 : i32
    return %c0_i32, %c0_i32_0 : i32, i32
  }
  func.func @transform_4(%arg0: i32) -> (i32, i32) {
    %c0_i32 = arith.constant 0 : i32
    %c0_i32_0 = arith.constant 0 : i32
    %c0_i32_1 = arith.constant 0 : i32
    return %c0_i32, %c0_i32_0 : i32, i32
  }
  func.func @transform_5(%arg0: i32) -> (i32, i32) {
    %c0_i32 = arith.constant 0 : i32
    %c0_i32_0 = arith.constant 0 : i32
    return %arg0, %c0_i32 : i32, i32
  }
}

</mosaic_0001>

<bundles_post_ra>
// kernel: twod_gnet_forward.1
= control target key start
LH: loop header
LB: loop body
LE: loop exit
PB: predicated region body
PF: predicated region fallthrough
CT: control target
= control target key end

     0   :  { %10 = vsyncpa [#allocation3], 0  ;;  %s318_s0 = inlined_call_operand.vmem [shape: f32[8,256], index: 0, kind: input, shape index: {}]   ;;  %s319_s1 = inlined_call_operand.hbm [shape: f32[256,128], index: 1, kind: input, shape index: {}]   ;;  %s320_s2 = inlined_call_operand.vmem [shape: f32[1,128], index: 2, kind: input, shape index: {}]   ;;  %s321_s3 = inlined_call_operand.hbm [shape: f32[128,128], index: 3, kind: input, shape index: {}]   ;;  %s322_s4 = inlined_call_operand.vmem [shape: f32[1,128], index: 4, kind: input, shape index: {}]   ;;  %s323_s5 = inlined_call_operand.vmem [shape: f32[8,128], index: 5, kind: output, shape index: {}]  }
   0x1   :  { %s18_s20 = sshll.u32 %s319_s1, 4  ;;  %s19_s20 = int_to_ptr.hbm [resolvable:$true] %s18_s20 }
   0x2   :  { %11 = vsyncpa [#allocation5], 0  ;;  %s263_s21 = smov [#allocation2]   ;;  %s33_s25 = sshll.u32 %s321_s3, 4  ;;  %s34_s25 = int_to_ptr.hbm [resolvable:$true] %s33_s25 }
   0x3   :  { %s20_s22 = sshll.u32 %s263_s21, 4  ;;  %s264_s26 = smov 128   ;;  %s21_s22 = int_to_ptr.vmem [resolvable:$true] %s20_s22 }
   0x4   :  { %s265_s27 = smov 8   ;;  %s266_s28 = smov [#allocation4]  }
   0x5   :  { %26 = dma.hbm_to_vmem [thread:$0]  %s19_s20, 4096, %s21_s22, [#allocation3], %s264_s26, %s264_s26, %s265_s27  }
   0x6   :  { %s35_s29 = sshll.u32 %s266_s28, 4  ;;  %s36_s29 = int_to_ptr.vmem [resolvable:$true] %s35_s29 }
   0x7   :  { %41 = dma.hbm_to_vmem [thread:$0]  %s34_s25, 2048, %s36_s29, [#allocation5], %s264_s26, %s264_s26, %s265_s27  }
   0x8   :  { %259 = dma.done.wait [#allocation3], 4096  }
   0x9   :  { %260 = vsyncadd [#allocation3], 4294963200 }
   0xa   :  { %261 = dma.done.wait [#allocation5], 2048  }
   0xb   :  { %262 = vsyncadd [#allocation5], 4294965248  ;;  %v69_v0 = vld [vmem:[#allocation2 + $0x78] sm:$0xff]  ;;  %v68_v1 = vld [vmem:[#allocation2 + $0x70] sm:$0xff] }
   0xc   :  { %v85_v2 = vld [vmem:[#allocation2 + $0xf8] sm:$0xff]  ;;  %90 = vmatpush.msra.mxu0 %v69_v0  ;;  %v84_v3 = vld [vmem:[#allocation2 + $0xf0] sm:$0xff]  ;;  %v67_v4 = vld [vmem:[#allocation2 + $0x68] sm:$0xff] }
   0xd   :  { %110 = vmatpush.msra.mxu1 %v85_v2  ;;  %v83_v5 = vld [vmem:[#allocation2 + $0xe8] sm:$0xff]  ;;  %v66_v6 = vld [vmem:[#allocation2 + $0x60] sm:$0xff]  ;;  %v65_v8 = vld [vmem:[#allocation2 + $0x58] sm:$0xff] }
   0xe   :  { %91 = vmatpush.msra.mxu0 %v68_v1  ;;  %v82_v7 = vld [vmem:[#allocation2 + $0xe0] sm:$0xff]  ;;  %v81_v9 = vld [vmem:[#allocation2 + $0xd8] sm:$0xff]  ;;  %v64_v10 = vld [vmem:[#allocation2 + $0x50] sm:$0xff] }
   0xf   :  { %111 = vmatpush.msra.mxu1 %v84_v3  ;;  %v80_v11 = vld [vmem:[#allocation2 + $0xd0] sm:$0xff]  ;;  %v63_v12 = vld [vmem:[#allocation2 + $0x48] sm:$0xff]  ;;  %v146_v14 = vld [vmem:[#allocation4 + $0x78] sm:$0xff] }
  0x10   :  { %92 = vmatpush.msra.mxu0 %v67_v4  ;;  %v79_v13 = vld [vmem:[#allocation2 + $0xc8] sm:$0xff]  ;;  %v145_v15 = vld [vmem:[#allocation4 + $0x70] sm:$0xff]  ;;  %v62_v16 = vld [vmem:[#allocation2 + $0x40] sm:$0xff]  ;;  %151 = vmatpush.msra.mxu2 %v146_v14 }
  0x11   :  { %112 = vmatpush.msra.mxu1 %v83_v5  ;;  %v78_v17 = vld [vmem:[#allocation2 + $0xc0] sm:$0xff]  ;;  %v144_v18 = vld [vmem:[#allocation4 + $0x68] sm:$0xff]  ;;  %v61_v19 = vld [vmem:[#allocation2 + $0x38] sm:$0xff] }
  0x12   :  { %93 = vmatpush.msra.mxu0 %v66_v6  ;;  %v77_v20 = vld [vmem:[#allocation2 + $0xb8] sm:$0xff]  ;;  %152 = vmatpush.msra.mxu2 %v145_v15  ;;  %v143_v21 = vld [vmem:[#allocation4 + $0x60] sm:$0xff]  ;;  %v60_v22 = vld [vmem:[#allocation2 + $0x30] sm:$0xff] }
  0x13   :  { %113 = vmatpush.msra.mxu1 %v82_v7  ;;  %v76_v23 = vld [vmem:[#allocation2 + $0xb0] sm:$0xff]  ;;  %v142_v24 = vld [vmem:[#allocation4 + $0x58] sm:$0xff]  ;;  %v59_v25 = vld [vmem:[#allocation2 + $0x28] sm:$0xff] }
  0x14   :  { %94 = vmatpush.msra.mxu0 %v65_v8  ;;  %153 = vmatpush.msra.mxu2 %v144_v18  ;;  %v75_v26 = vld [vmem:[#allocation2 + $0xa8] sm:$0xff]  ;;  %v141_v27 = vld [vmem:[#allocation4 + $0x50] sm:$0xff]  ;;  %v58_v28 = vld [vmem:[#allocation2 + $0x20] sm:$0xff] }
  0x15   :  { %114 = vmatpush.msra.mxu1 %v81_v9  ;;  %v74_v29 = vld [vmem:[#allocation2 + $0xa0] sm:$0xff]  ;;  %v140_v30 = vld [vmem:[#allocation4 + $0x48] sm:$0xff]  ;;  %v57_v31 = vld [vmem:[#allocation2 + $0x18] sm:$0xff] }
  0x16   :  { %95 = vmatpush.msra.mxu0 %v64_v10  ;;  %154 = vmatpush.msra.mxu2 %v143_v21  ;;  %v73_v32 = vld [vmem:[#allocation2 + $0x98] sm:$0xff]  ;;  %v139_v33 = vld [vmem:[#allocation4 + $0x40] sm:$0xff]  ;;  %v56_v34 = vld [vmem:[#allocation2 + $0x10] sm:$0xff] }
  0x17   :  { %115 = vmatpush.msra.mxu1 %v80_v11  ;;  %v72_v35 = vld [vmem:[#allocation2 + $0x90] sm:$0xff]  ;;  %v138_v36 = vld [vmem:[#allocation4 + $0x38] sm:$0xff]  ;;  %v55_v37 = vld [vmem:[#allocation2 + $0x8] sm:$0xff] }
  0x18   :  { %96 = vmatpush.msra.mxu0 %v63_v12  ;;  %155 = vmatpush.msra.mxu2 %v142_v24  ;;  %v71_v38 = vld [vmem:[#allocation2 + $0x88] sm:$0xff]  ;;  %v137_v39 = vld [vmem:[#allocation4 + $0x30] sm:$0xff]  ;;  %v54_v40 = vld [vmem:[#allocation2] sm:$0xff] }
  0x19   :  { %116 = vmatpush.msra.mxu1 %v79_v13  ;;  %v70_v41 = vld [vmem:[#allocation2 + $0x80] sm:$0xff]  ;;  %v53_v43 = vld [vmem:[%s318_s0 + $0x8] sm:$0xff]  ;;  %v134_v46 = vld [vmem:[#allocation4 + $0x18] sm:$0xff] }
  0x1a   :  { %97 = vmatpush.msra.mxu0 %v62_v16  ;;  %156 = vmatpush.msra.mxu2 %v141_v27  ;;  %v52_v42 = vld [vmem:[%s318_s0] sm:$0xff]  ;;  %v136_v44 = vld [vmem:[#allocation4 + $0x28] sm:$0xff]  ;;  %v133_v47 = vld [vmem:[#allocation4 + $0x10] sm:$0xff] }
  0x1b   :  { %117 = vmatpush.msra.mxu1 %v78_v17  ;;  %v135_v45 = vld [vmem:[#allocation4 + $0x20] sm:$0xff]  ;;  %v132_v48 = vld [vmem:[#allocation4 + $0x8] sm:$0xff] }
  0x1c   :  { %98 = vmatpush.msra.mxu0 %v61_v19  ;;  %157 = vmatpush.msra.mxu2 %v140_v30  ;;  %v131_v49 = vld [vmem:[#allocation4] sm:$0xff] }
  0x1d   :  { %118 = vmatpush.msra.mxu1 %v77_v20  ;;  %v205_v50 = vld [vmem:[%s320_s2] ss:$0 sm:$0xff] }
  0x1e   :  { %99 = vmatpush.msra.mxu0 %v60_v22  ;;  %158 = vmatpush.msra.mxu2 %v139_v33  ;;  %v206_v56 = vld [vmem:[%s322_s4] ss:$0 sm:$0xff] }
  0x1f   :  { %119 = vmatpush.msra.mxu1 %v76_v23 }
  0x20   :  { %100 = vmatpush.msra.mxu0 %v59_v25  ;;  %159 = vmatpush.msra.mxu2 %v138_v36 }
  0x21   :  { %120 = vmatpush.msra.mxu1 %v75_v26 }
  0x22   :  { %101 = vmatpush.msra.mxu0 %v58_v28  ;;  %160 = vmatpush.msra.mxu2 %v137_v39 }
  0x23   :  { %121 = vmatpush.msra.mxu1 %v74_v29 }
  0x24   :  { %102 = vmatpush.msra.mxu0 %v57_v31  ;;  %161 = vmatpush.msra.mxu2 %v136_v44 }
  0x25   :  { %122 = vmatpush.msra.mxu1 %v73_v32 }
  0x26   :  { %103 = vmatpush.msra.mxu0 %v56_v34  ;;  %162 = vmatpush.msra.mxu2 %v135_v45 }
  0x27   :  { %123 = vmatpush.msra.mxu1 %v72_v35 }
  0x28   :  { %104 = vmatpush.msra.mxu0 %v55_v37  ;;  %163 = vmatpush.msra.mxu2 %v134_v46 }
  0x29   :  { %124 = vmatpush.msra.mxu1 %v71_v38 }
  0x2a   :  { %105 = vmatpush.msra.mxu0 %v54_v40  ;;  %164 = vmatpush.msra.mxu2 %v133_v47 }
  0x2b   :  { %125 = vmatpush.msra.mxu1 %v70_v41  ;;  %106 = vmatmul.f32.vlgmr.msra.gmra.mxu0 %v52_v42 }
  0x2c   :  { %126 = vmatmul.f32.vlgmr.msra.gmra.mxu1 %v53_v43  ;;  %165 = vmatpush.msra.mxu2 %v132_v48 }
  0x2e   :  { %166 = vmatpush.msra.mxu2 %v131_v49 }
  0xa8   :  { %v107_v51 = vpop.f32.mrf.mxu0 }
  0xa9   :  { %v127_v52 = vpop.f32.mrf.mxu1  ;;  %v108_v53 = vadd.f32 %v205_v50, %v107_v51 }
  0xab   :  { %v128_v54 = vadd.f32 %v127_v52, %v108_v53 }
  0xad   :  { %v130_v55 = vmax.f32 %v128_v54, 0.0 }
  0xaf   :  { %167 = vmatmul.f32.vlgmr.msra.gmra.mxu2 %v130_v55 }
 0x132   :  { %v168_v57 = vpop.f32.mrf.mxu2 }
 0x133   :  { %v169_v58 = vadd.f32 %v206_v56, %v168_v57 }
 0x135   :  { %171 = vmax.xlane.f32.xlu0 %v169_v58 }
 0x1a8   :  { %v172_v59 = vpop.xlane.xlu0 %171 }
 0x1a9   :  { %v173_v60 = vsub.f32 %v169_v58, %v172_v59 }
 0x1ab   :  { %v174_v61 = vmul.f32 1.442695, %v173_v60 }
 0x1ad   :  { %207 = vpow2.f32 %v174_v61 }
 0x1b3   :  { %v208_v62 = vpop.eup %207 }
 0x1b4   :  { %176 = vadd.xlane.f32.xlu0 %v208_v62 }
 0x227   :  { %v177_v63 = vpop.xlane.xlu0 %176 }
 0x228   :  { %209 = vrcp.f32 %v177_v63  ;;  %v189_v3 = vand.u32 2147483648, %v177_v63  ;;  %v187_v5 = vand.u32 2147483647, %v177_v63  ;;  %vm183_vm1 = vweird.f32 %v177_v63 }
 0x22a   :  { %v190_v7 = vor.u32 1.1754944e-38, %v189_v3  ;;  %vm188_vm3 = vcmp.eq.f32.partialorder %v187_v5, 8.507059e+37 }
 0x22e   :  { %v210_v0 = vpop.eup %209 }
 0x22f   :  { %v179_v1 = vmul.f32 %v210_v0, %v177_v63  ;;  %vm184_vm0 = vweird.f32 %v210_v0 }
 0x230   :  { %vm185_vm2 = vmor %vm183_vm1, %vm184_vm0 }
 0x231   :  { %v180_v2 = vsub.f32 1.0, %v179_v1 }
 0x233   :  { %v181_v4 = vmul.f32 %v210_v0, %v180_v2 }
 0x235   :  { %v182_v6 = vadd.f32 %v210_v0, %v181_v4 }
 0x237   :  { %v186_v8 = vsel %vm185_vm2, %v210_v0, %v182_v6 }
 0x238   :  { %v191_v9 = vsel %vm188_vm3, %v190_v7, %v186_v8 }
 0x239   :  { %v193_v10 = vmul.f32 %v208_v62, %v191_v9 }
 0x23b   :  { %194 = vst [vmem:[%s323_s5] sm:$0xff] %v193_v10 }
 0x23c   :  { %199 = vsyncpa [#allocation3], 1 }
 0x23d   :  { %200 = vsyncpa [#allocation5], 1 }

</bundles_post_ra>
